<compile_context>
chip_gen: v6e
topology: v6e:2x2x1
jax: 0.10.0
libtpu: 0.0.40
codegen_flags: <defaults>
</compile_context>

<pallas_src>
import math

import jax
import jax.numpy as jnp
from jax.experimental import pallas as pl
from jax.experimental.pallas import tpu as pltpu


def _self_attention_kernel(x_ref, wqkv_ref, bqkv_ref, o_ref):
    """x_ref: (B_TILE, S, D_pad); wqkv_ref: (D_pad, 3*D_pad); bqkv_ref: (1, 3*D_pad)."""
    b_tile, s, d_pad = x_ref.shape
    in_dtype = x_ref.dtype

    # ---- Fused QKV projection: one wide MXU pass, f32 accumulation.
    x2 = x_ref[...].reshape(b_tile * s, d_pad)                           # (B*S, Dp)
    qkv = jnp.dot(x2, wqkv_ref[...],
                  preferred_element_type=jnp.float32)                    # (B*S, 3Dp) f32
    qkv = qkv + bqkv_ref[...].astype(jnp.float32)
    # Drop the wide f32 intermediate to the input dtype right away: halves
    # intermediate VMEM and lets q/k/v/weights feed the MXU at native rate
    # (bf16 inputs) while accumulation below stays f32.
    qkv = qkv.astype(in_dtype).reshape(b_tile, s, 3 * d_pad)
    q = qkv[..., 0 * d_pad:1 * d_pad]     # 1/sqrt(D) already folded into Wq/bq
    k = qkv[..., 1 * d_pad:2 * d_pad]
    v = qkv[..., 2 * d_pad:3 * d_pad]

    # ---- Scores: contract the feature dims of q and k directly.  This lowers
    # to a batched dot_general whose RHS contracting dim is the feature dim,
    # so the MXU consumes k without materializing k.T.
    scores = jnp.einsum("bqd,bkd->bqk", q, k,
                        preferred_element_type=jnp.float32)              # (B, S, S) f32

    # ---- Numerically stable softmax over the key axis (f32 VPU/EUP math).
    m = jnp.max(scores, axis=-1, keepdims=True)
    e = jnp.exp(scores - m)
    denom = jnp.sum(e, axis=-1, keepdims=True)
    # EUP approximate reciprocal (otherwise-idle slot) + one Newton refinement
    # on the tiny (B, S, 1) column to recover ~full f32 precision cheaply.
    r = pl.reciprocal(denom, approx=True)
    r = r * (2.0 - denom * r)
    weights = (e * r).astype(in_dtype)    # native-dtype operand for the MXU

    # ---- Output: weights @ V (batched MXU matmul, f32 accumulate).
    out = jnp.einsum("bqk,bkd->bqd", weights, v,
                     preferred_element_type=jnp.float32)                 # (B, S, Dp)
    o_ref[...] = out.astype(o_ref.dtype)


def _round_up(x, m):
    return (x + m - 1) // m * m


def fuse_qkv_params(wq, bq, wk, bk, wv, bv):
    """One-time parameter prep (hoisted out of the per-call path).

    * Folds 1/sqrt(D) into the query projection (so the kernel never scales
      the O(S^2) score matrix).
    * Fuses Q/K/V into a single (D_pad, 3*D_pad) weight and (1, 3*D_pad) bias.
    * Zero-pads the feature dim to a multiple of 128 -> lane-dense stores and
      MXU-aligned matmuls; padded q/k/v columns are exactly zero so results
      are unchanged.

    Weights are the (in, out) transpose of torch's nn.Linear weight; biases
    are (1, D).  Returns (w_qkv, b_qkv).
    """
    d = wq.shape[0]
    d_pad = _round_up(d, 128)
    scale = 1.0 / math.sqrt(float(d))

    def pad_w(w):
        return jnp.pad(w, ((0, d_pad - w.shape[0]), (0, d_pad - w.shape[1])))

    def pad_b(b):
        b = b.reshape(1, -1)
        return jnp.pad(b, ((0, 0), (0, d_pad - b.shape[1])))

    w_qkv = jnp.concatenate([pad_w(wq * scale), pad_w(wk), pad_w(wv)], axis=1)
    b_qkv = jnp.concatenate([pad_b(bq * scale), pad_b(bk), pad_b(bv)], axis=1)
    return w_qkv, b_qkv


def _vmem_footprint_bytes(b_tile, s, d_pad, itemsize):
    """Per-grid-step VMEM footprint estimate (no fudge factor)."""
    io = 2 * 2 * b_tile * s * d_pad * itemsize            # x + out, double-buffered
    w = (d_pad * 3 * d_pad + 3 * d_pad) * itemsize        # fused W/b, single-buffered
    proj = b_tile * s * 3 * d_pad * (4 + 2 * itemsize)    # f32 qkv + in-dtype qkv + q/k/v
    attn = b_tile * s * s * (2 * 4 + itemsize)            # scores + e (f32) + weights
    attn += b_tile * s * d_pad * 4                        # f32 output accumulator
    return io + w + proj + attn


def _pick_b_tile(batch, s, d_pad, itemsize, budget):
    # Guarantee >= 2 grid steps when B >= 2 so dimension_semantics=("parallel",)
    # can shard the batch axis across v7x's two TensorCores.
    cap = batch if batch < 2 else max(1, batch // 2)
    divisors = [t for t in range(1, batch + 1) if batch % t == 0 and t <= cap]
    for t in sorted(divisors, reverse=True):
        if _vmem_footprint_bytes(t, s, d_pad, itemsize) <= budget:
            return t
    return 1


def self_attention(x, w_qkv, b_qkv):
    """x: (B, S, D). w_qkv/b_qkv: output of fuse_qkv_params (padded, pre-scaled)."""
    B, S, D = x.shape
    d_pad = w_qkv.shape[0]
    assert w_qkv.shape[1] == 3 * d_pad and b_qkv.shape == (1, 3 * d_pad)

    # Per-generation VMEM budget (v5e/v6e: 128 MiB, v7x: 64 MiB per TC).
    try:
        vmem_cap = int(pltpu.get_tpu_info().vmem_capacity_bytes)
    except Exception:
        vmem_cap = 64 * 2**20   # conservative fallback (v7x per-TC)
    budget = int(vmem_cap * 0.8)

    itemsize = x.dtype.itemsize
    b_tile = _pick_b_tile(B, S, d_pad, itemsize, budget)
    n_blocks = B // b_tile

    needed = _vmem_footprint_bytes(b_tile, S, d_pad, itemsize)
    vmem_limit = int(min(budget, max(32 * 2**20, 2 * needed)))

    # Zero-pad the feature dim to the lane-aligned width (inert, see fuse_qkv_params).
    if d_pad != D:
        x_in = jnp.pad(x, ((0, 0), (0, 0), (0, d_pad - D)))
    else:
        x_in = x

    out_pad = pl.pallas_call(
        _self_attention_kernel,
        out_shape=jax.ShapeDtypeStruct((B, S, d_pad), x.dtype),
        grid_spec=pltpu.PrefetchScalarGridSpec(
            num_scalar_prefetch=0,
            grid=(n_blocks,),
            in_specs=[
                pl.BlockSpec((b_tile, S, d_pad), lambda b: (b, 0, 0)),       # x
                # Grid-invariant weights/bias: single-buffer (no point
                # double-buffering a constant block -> halves weight VMEM).
                pl.BlockSpec((d_pad, 3 * d_pad), lambda b: (0, 0),
                             pipeline_mode=pl.Buffered(1)),                  # fused W_qkv
                pl.BlockSpec((1, 3 * d_pad), lambda b: (0, 0),
                             pipeline_mode=pl.Buffered(1)),                  # fused b_qkv
            ],
            out_specs=pl.BlockSpec((b_tile, S, d_pad), lambda b: (b, 0, 0)),
        ),
        compiler_params=pltpu.CompilerParams(
            dimension_semantics=("parallel",),   # batch axis shards across v7x's 2 TCs
            vmem_limit_bytes=vmem_limit),
    )(x_in, w_qkv, b_qkv)

    return out_pad[..., :D] if d_pad != D else out_pad


def _reference(x, wq, bq, wk, bk, wv, bv):
    q = x @ wq + bq
    k = x @ wk + bk
    v = x @ wv + bv
    scores = jnp.einsum("bsd,btd->bst", q, k) / math.sqrt(q.shape[-1])
    weights = jax.nn.softmax(scores, axis=-1)
    return jnp.einsum("bst,btd->bsd", weights, v)


if __name__ == "__main__":
    key = jax.random.PRNGKey(0)
    B, S, D = 2, 8, 32  # batch, seq, input_dim

    k_x, k_wq, k_bq, k_wk, k_bk, k_wv, k_bv = jax.random.split(key, 7)
    x = jax.random.normal(k_x, (B, S, D), dtype=jnp.float32)

    # nn.Linear(input_dim, input_dim): torch weight is (out, in), bias (out,).
    # We init the (in, out) transpose directly so the kernel does x @ W + b.
    scale = 1.0 / math.sqrt(D)
    wq = jax.random.uniform(k_wq, (D, D), jnp.float32, -scale, scale)
    wk = jax.random.uniform(k_wk, (D, D), jnp.float32, -scale, scale)
    wv = jax.random.uniform(k_wv, (D, D), jnp.float32, -scale, scale)
    bq = jax.random.uniform(k_bq, (1, D), jnp.float32, -scale, scale)
    bk = jax.random.uniform(k_bk, (1, D), jnp.float32, -scale, scale)
    bv = jax.random.uniform(k_bv, (1, D), jnp.float32, -scale, scale)

    # One-time parameter fusion / padding (hoisted out of the per-call path).
    w_qkv, b_qkv = fuse_qkv_params(wq, bq, wk, bk, wv, bv)

    out = self_attention(x, w_qkv, b_qkv)
    out = jax.block_until_ready(out)

    ref = _reference(x, wq, bq, wk, bk, wv, bv)
    assert out.shape == (B, S, D)
    assert jnp.allclose(out, ref, atol=1e-4, rtol=1e-4), "mismatch vs reference"
    print("KERNEL_OK")
</pallas_src>

<mosaic_0001>
module attributes {stable_mosaic.version = 11 : i64} {
  func.func @_self_attention_kernel(%arg0: i32, %arg1: memref<1x8x128xf32, #tpu.memory_space<vmem>>, %arg2: memref<128x384xf32, #tpu.memory_space<vmem>>, %arg3: memref<1x384xf32, #tpu.memory_space<vmem>>, %arg4: memref<1x8x128xf32, #tpu.memory_space<vmem>>) attributes {dimension_semantics = [#tpu.dimension_semantics<parallel>], iteration_bounds = array<i64: 2>, scalar_prefetch = 0 : i64, scratch_operands = 0 : i64, tpu.core_type = #tpu.core_type<tc>, window_params = [{transform_indices = @transform_0, window_bounds = array<i64: 1, 8, 128>}, {pipeline_mode = #tpu.pipeline_mode<synchronous>, transform_indices = @transform_1, window_bounds = array<i64: 128, 384>}, {pipeline_mode = #tpu.pipeline_mode<synchronous>, transform_indices = @transform_2, window_bounds = array<i64: 1, 384>}, {transform_indices = @transform_3, window_bounds = array<i64: 1, 8, 128>}]} {
    %c0 = arith.constant 0 : index
    %c0_0 = arith.constant 0 : index
    %c0_1 = arith.constant 0 : index
    %0 = vector.load %arg1[%c0, %c0_0, %c0_1] : memref<1x8x128xf32, #tpu.memory_space<vmem>>, vector<1x8x128xf32>
    %1 = vector.shape_cast %0 : vector<1x8x128xf32> to vector<8x128xf32>
    %c0_2 = arith.constant 0 : index
    %c0_3 = arith.constant 0 : index
    %2 = vector.load %arg2[%c0_2, %c0_3] : memref<128x384xf32, #tpu.memory_space<vmem>>, vector<128x384xf32>
    %cst = arith.constant dense<0.000000e+00> : vector<8x384xf32>
    %3 = tpu.matmul %1, %2, %cst {dimension_numbers = #tpu.dot_dimension_numbers<[1], [0], [0], [1], [0, 0, 1, 1], [], []>} : vector<8x128xf32>, vector<128x384xf32>, vector<8x384xf32> -> vector<8x384xf32>
    %c0_4 = arith.constant 0 : index
    %c0_5 = arith.constant 0 : index
    %4 = vector.load %arg3[%c0_4, %c0_5] : memref<1x384xf32, #tpu.memory_space<vmem>>, vector<1x384xf32>
    %5 = vector.broadcast %4 : vector<1x384xf32> to vector<8x384xf32>
    %6 = arith.addf %3, %5 : vector<8x384xf32>
    %7 = vector.shape_cast %6 : vector<8x384xf32> to vector<1x8x384xf32>
    %8 = vector.extract_strided_slice %7 {offsets = [0, 0, 0], sizes = [1, 8, 128], strides = [1, 1, 1]} : vector<1x8x384xf32> to vector<1x8x128xf32>
    %9 = vector.extract_strided_slice %7 {offsets = [0, 0, 128], sizes = [1, 8, 128], strides = [1, 1, 1]} : vector<1x8x384xf32> to vector<1x8x128xf32>
    %10 = vector.extract_strided_slice %7 {offsets = [0, 0, 256], sizes = [1, 8, 128], strides = [1, 1, 1]} : vector<1x8x384xf32> to vector<1x8x128xf32>
    "tpu.trace_start"() <{level = 10 : i32, message = "bqd,bkd->bqk"}> : () -> ()
    %cst_6 = arith.constant dense<0.000000e+00> : vector<1x8x8xf32>
    %11 = tpu.matmul %8, %9, %cst_6 {dimension_numbers = #tpu.dot_dimension_numbers<[2], [2], [1], [1], [0, 0, 0, 1, 1, 1], [0], [0]>} : vector<1x8x128xf32>, vector<1x8x128xf32>, vector<1x8x8xf32> -> vector<1x8x8xf32>
    "tpu.trace_stop"() : () -> ()
    %cst_7 = arith.constant dense<0xFF800000> : vector<1x8xf32>
    %12 = vector.multi_reduction <maximumf>, %11, %cst_7 [2] : vector<1x8x8xf32> to vector<1x8xf32>
    %13 = vector.shape_cast %12 : vector<1x8xf32> to vector<1x8x1xf32>
    %14 = vector.broadcast %13 : vector<1x8x1xf32> to vector<1x8x8xf32>
    %15 = arith.subf %11, %14 : vector<1x8x8xf32>
    %16 = math.exp %15 : vector<1x8x8xf32>
    %cst_8 = arith.constant dense<0.000000e+00> : vector<1x8xf32>
    %17 = vector.multi_reduction <add>, %16, %cst_8 [2] : vector<1x8x8xf32> to vector<1x8xf32>
    %18 = vector.shape_cast %17 : vector<1x8xf32> to vector<1x8x1xf32>
    %19 = tpu.reciprocal %18 {approx = true} : vector<1x8x1xf32> -> vector<1x8x1xf32>
    %20 = arith.mulf %18, %19 : vector<1x8x1xf32>
    %cst_9 = arith.constant 2.000000e+00 : f32
    %21 = vector.broadcast %cst_9 : f32 to vector<1x8x1xf32>
    %22 = arith.subf %21, %20 : vector<1x8x1xf32>
    %23 = arith.mulf %19, %22 : vector<1x8x1xf32>
    %24 = vector.broadcast %23 : vector<1x8x1xf32> to vector<1x8x8xf32>
    %25 = arith.mulf %16, %24 : vector<1x8x8xf32>
    "tpu.trace_start"() <{level = 10 : i32, message = "bqk,bkd->bqd"}> : () -> ()
    %cst_10 = arith.constant dense<0.000000e+00> : vector<1x8x128xf32>
    %26 = tpu.matmul %25, %10, %cst_10 {dimension_numbers = #tpu.dot_dimension_numbers<[2], [1], [1], [2], [0, 0, 0, 1, 1, 2], [0], [0]>} : vector<1x8x8xf32>, vector<1x8x128xf32>, vector<1x8x128xf32> -> vector<1x8x128xf32>
    "tpu.trace_stop"() : () -> ()
    %c0_11 = arith.constant 0 : index
    %c0_12 = arith.constant 0 : index
    %c0_13 = arith.constant 0 : index
    %27 = vector.load %arg4[%c0_11, %c0_12, %c0_13] : memref<1x8x128xf32, #tpu.memory_space<vmem>>, vector<1x8x128xf32>
    tpu.vector_store %arg4[%c0_11, %c0_12, %c0_13], %26 {strides = array<i32>} : memref<1x8x128xf32, #tpu.memory_space<vmem>>, vector<1x8x128xf32>,
    return
  }
  func.func @transform_0(%arg0: i32) -> (i32, i32, i32) {
    %c0_i32 = arith.constant 0 : i32
    %c0_i32_0 = arith.constant 0 : i32
    %c0_i32_1 = arith.constant 0 : i32
    return %arg0, %c0_i32, %c0_i32_0 : i32, i32, i32
  }
  func.func @transform_1(%arg0: i32) -> (i32, i32) {
    %c0_i32 = arith.constant 0 : i32
    %c0_i32_0 = arith.constant 0 : i32
    %c0_i32_1 = arith.constant 0 : i32
    return %c0_i32, %c0_i32_0 : i32, i32
  }
  func.func @transform_2(%arg0: i32) -> (i32, i32) {
    %c0_i32 = arith.constant 0 : i32
    %c0_i32_0 = arith.constant 0 : i32
    %c0_i32_1 = arith.constant 0 : i32
    return %c0_i32, %c0_i32_0 : i32, i32
  }
  func.func @transform_3(%arg0: i32) -> (i32, i32, i32) {
    %c0_i32 = arith.constant 0 : i32
    %c0_i32_0 = arith.constant 0 : i32
    %c0_i32_1 = arith.constant 0 : i32
    return %arg0, %c0_i32, %c0_i32_0 : i32, i32, i32
  }
}

</mosaic_0001>

<bundles_post_ra>
// kernel: tpu_custom_call.1
= control target key start
LH: loop header
LB: loop body
LE: loop exit
PB: predicated region body
PF: predicated region fallthrough
CT: control target
= control target key end

     0   :  { %8 = vsyncpa [#allocation3], 0  ;;  %s1176_s0 = inlined_call_operand.hbm [shape: f32[2,8,128], index: 0, kind: input, shape index: {}]   ;;  %s1177_s1 = inlined_call_operand.hbm [shape: f32[128,384], index: 1, kind: input, shape index: {}]   ;;  %s1178_s2 = inlined_call_operand.vmem [shape: f32[1,384], index: 2, kind: input, shape index: {}]   ;;  %s1179_s3 = inlined_call_operand.hbm [shape: f32[2,8,128], index: 3, kind: output, shape index: {}]  }
   0x1   :  { %10 = vsyncpa [#allocation3 + $0x1], 0 }
   0x2   :  { %11 = vsyncpa [#allocation6], 0 }
   0x3   :  { %12 = vsyncpa [#allocation4], 0 }
   0x4   :  { %14 = vsyncpa [#allocation4 + $0x1], 0  ;;  %s958_s12 = smov 0   ;;  %s960_s13 = smov 0  }
   0x5   :  { %s962_s14 = smov 0   ;;  %s964_s15 = smov 0  }
   0x6 LB: > { %s979_s16 = sadd.s32 4294967295, %s929_s15   ;;  %s661_s17 = sadd.s32 4294967294, %s929_s15   ;;  %s929_s15 = sphi %s964_s15, %s1201_s15   ;;  %s925_s14 = sphi %s962_s14, %s1200_s14   ;;  %s921_s13 = sphi %s960_s13, %s1199_s13   ;;  %s917_s12 = sphi %s958_s12, %s1198_s12  }
   0x7   : > { %p40_p0 = scmp.ne.s32.totalorder %s921_s13, %s917_s12  ;;  %p1180_p1 = scmp.eq.s32.totalorder %s979_s16, 0 }
   0x8   : > { %p112_p3 = scmp.eq.s32.totalorder %s661_s17, 1  ;;  %p662_p5 = scmp.ge.s32.totalorder %s929_s15, 1 }
   0x9   : > { %p988_p4 = por %p1180_p1, %p40_p0  ;;  %p119_p7 = scmp.lt.s32.totalorder %s929_s15, 3 }
   0xa   : > { %p993_p6 = por %p112_p3, %p40_p0  ;;  %s931_s21 = smov [#allocation5]  }
   0xb   : > { %s1184_s18 = scalar_select %p988_p4, 1, 0 }
   0xc   : > { %s1185_s19 = scalar_select %p993_p6, 1, 0 }
   0xd   : > { %p998_p8 = pnand %p662_p5, %p119_p7  ;;  %s131_s22 = sshll.u32 %s931_s21, 4  ;;  %s132_s22 = int_to_ptr.vmem [resolvable:$true] %s131_s22 }
   0xe   : > { %s1012_s24 = sadd.s32 1, %s929_s15   ;;  %s27_s25 = sadd.s32 1, %s925_s14 }
   0xf   : > { %s1186_s20 = scalar_select %p998_p8, 1, 0 }
  0x10   : > { %p750_p9 = pneg %p998_p8  ;;  %s24_s26 = ssub.s32 %s929_s15, %s1012_s24 }
  0x11   : > { %s818_s27 = scalar_lea.vmem %s132_s22, 6144  ;;  %p826_p5 = scmp.lt.s32.totalorder %s132_s22, %s132_s22 }
  0x12   : > { %p1007_p11 = pnand %p750_p9, %p1180_p1  ;;  %p819_p13 = scmp.ne.s32.totalorder %s132_s22, %s818_s27 }
  0x13   : > { %p827_p7 = scmp.lt.s32.totalorder %s818_s27, %s818_s27 }
  0x14   : > { %p809_p12 = pneg %p1007_p11 }
  0x15   : > { %p828_p10 = por %p827_p7, %p826_p5 }
  0x16   : > { %p821_p0 = pnand %p819_p13, %p809_p12 }
  0x18   : > { %p822_p3 = pneg %p821_p0 }
  0x1a   : > { %p829_p2 = pnand %p828_p10, %p822_p3 }
  0x1c   : > { %832 = shalt.err (!%p829_p2)
}
  0x1d   : > { %s932_s28 = smov 384   ;;  %s933_s29 = smov 24  }
  0x1e   : > { %753 = dma.hbm_to_vmem [thread:$0]  (!%p1007_p11), %s1177_s1, 6144, %s132_s22, [#allocation6], %s932_s28, %s932_s28, %s933_s29  }
  0x1f   : > { %p25_p9 = scmp.eq.s32.totalorder %s24_s26, 0  ;;  %p34_p12 = scmp.ne.s32.totalorder %s925_s14, %s921_s13 }
  0x20   : > { %p35_p10 = scmp.eq.s32.totalorder %s929_s15, 0  ;;  %p763_p2 = scmp.lt.s32.totalorder %s929_s15, 2 }
  0x21   : > { %s1029_s5 = scalar_select %p25_p9, %s925_s14, %s27_s25  }
  0x22   : > { %p36_p13 = por %p35_p10, %p34_p12  ;;  %p1188_p0 = scmp.eq.s32.totalorder %s979_s16, 1 }
  0x23   : > { %s148_s7 = sand.u32 1, %s925_s14   ;;  %s666_s8 = sshll.u32 %s929_s15, 7 }
  0x24   : > { %p1033_p3 = por %p1188_p0, %p34_p12  ;;  %s665_s9 = sshll.u32 %s148_s7, 3 }
  0x25   : > { %s1042_s17 = scalar_lea.hbm %s1176_s0, %s666_s8  ;;  %s152_s21 = scalar_lea.vmem [#allocation2], %s665_s9 }
  0x26   : > { %s1189_s6 = scalar_select %p1033_p3, 1, 0 }
  0x27   : > { %s159_s22 = sshll.u32 %s152_s21, 4  ;;  %p1044_p11 = pnand %p763_p2, %p36_p13  ;;  %s160_s22 = int_to_ptr.vmem [resolvable:$true] %s159_s22 }
  0x28   : > { %s149_s25 = scalar_lea.sflag [#allocation3], %s148_s7  ;;  %s833_s26 = scalar_lea.hbm %s1042_s17, 128 }
  0x29   : > { %p834_p5 = scmp.ne.s32.totalorder %s1042_s17, %s833_s26  ;;  %p835_p7 = pneg %p1044_p11 }
  0x2a   : > { %s838_s29 = scalar_lea.hbm %s1176_s0, 256  ;;  %p839_p10 = scmp.lt.s32.totalorder %s1042_s17, %s1176_s0 }
  0x2b   : > { %p836_p9 = pnand %p835_p7, %p834_p5  ;;  %p840_p2 = scmp.lt.s32.totalorder %s838_s29, %s833_s26 }
  0x2d   : > { %p837_p12 = pneg %p836_p9  ;;  %p841_p13 = por %p840_p2, %p839_p10 }
  0x2f   : > { %p842_p0 = pnand %p841_p13, %p837_p12 }
  0x31   : > { %845 = shalt.err (!%p842_p0)
}
  0x32   : > { %s846_s8 = scalar_lea.vmem %s160_s22, 128  ;;  %s934_s7 = smov [#allocation2]  }
  0x33   : > { %p847_p1 = scmp.ne.s32.totalorder %s160_s22, %s846_s8  ;;  %s851_s9 = sshll.u32 %s934_s7, 4  ;;  %s852_s9 = int_to_ptr.vmem [resolvable:$false] %s851_s9 }
  0x34   : > { %s853_s10 = scalar_lea.vmem %s852_s9, 256  ;;  %p854_p5 = scmp.lt.s32.totalorder %s160_s22, %s852_s9 }
  0x35   : > { %p849_p6 = pnand %p847_p1, %p835_p7  ;;  %p855_p9 = scmp.lt.s32.totalorder %s853_s10, %s846_s8 }
  0x37   : > { %p850_p3 = pneg %p849_p6  ;;  %p856_p4 = por %p855_p9, %p854_p5 }
  0x39   : > { %p857_p8 = pnand %p856_p4, %p850_p3 }
  0x3b   : > { %860 = shalt.err (!%p857_p8)
}
  0x3c   : > { %757 = dma.hbm_to_vmem [thread:$0]  (!%p1044_p11), %s1042_s17, 128, %s160_s22, %s149_s25  }
  0x3d   : > { %p1191_p12 = scmp.ne.s32.totalorder %s1186_s20, 0 }
  0x3e   : > { %s1065_s11 = sand.u32 (!%p1191_p12), 1, %s921_s13   ;;  %p1192_p1 = scmp.ne.s32.totalorder (!%p1191_p12), %s1184_s18, 0 }
  0x3f   : > { %168 = sbr.rel (%p1191_p12) target bundleno = 1024 (0x400), region = 32  ;;  %s668_s21 = sshll.u32 (!%p1191_p12), %s1065_s11, 3 }
  0x40   : > { %s171_s26 = scalar_lea.sflag (!%p1191_p12), [#allocation3], %s1065_s11  ;;  %s1071_s27 = scalar_lea.vmem (!%p1191_p12), [#allocation2], %s668_s21 }
  0x44   : > { %904 = dma.done.wait (%p1192_p1), %s171_s26, 128  }
  0x45   : > { %906 = vsyncadd (%p1192_p1), %s171_s26, 4294967168  ;;  %p1193_p4 = scmp.eq.s32.totalorder %s979_s16, 0 }
  0x47   : > { %908 = dma.done.wait (%p1193_p4), [#allocation6], 6144   ;;  %p1194_p6 = pmov %p1193_p4 }
  0x48   : > { %v935_v0 = vmov 0.0   ;;  %v248_v1 = vld [vmem:[#allocation5 + $0x170] sm:$0xff]  ;;  %v247_v2 = vld [vmem:[#allocation5 + $0x168] sm:$0xff]  ;;  %v245_v3 = vld [vmem:[#allocation5 + $0x158] sm:$0xff]  ;;  %vm936_vm0 = vmmov 0   ;;  %v252_v34 = vlaneseq  ;;  %vm478_vm1 = vcmask 64512  }
  0x49   : > { %910 = vsyncadd (%p1194_p6), [#allocation6], 4294961152  ;;  %331 = vmatprep.mubr.f32.mxu0 %v935_v0  ;;  %697 = vmatprep.subr.mxu1 %v935_v0  ;;  %v244_v4 = vld [vmem:[#allocation5 + $0x150] sm:$0xff]  ;;  %v242_v5 = vld [vmem:[#allocation5 + $0x140] sm:$0xff]  ;;  %s200_s17 = scalar_lea.vmem [#allocation7], %s668_s21  ;;  %s673_s23 = sshll.u32 %s979_s16, 7 }
  0x4a   : > { %267 = vmatprep.subr.mxu0 %v248_v1  ;;  %v241_v6 = vld [vmem:[#allocation5 + $0x138] sm:$0xff]  ;;  %v239_v7 = vld [vmem:[#allocation5 + $0x128] sm:$0xff]  ;;  %v238_v8 = vld [vmem:[#allocation5 + $0x120] sm:$0xff]  ;;  %729 = vmatprep.mubr.msk.f32.mxu1 %vm936_vm0, %v935_v0  ;;  %v1092_v35 = vshrl.u32 %v252_v34, 7  ;;  %s581_s22 = sshll.u32 %s200_s17, 4  ;;  %s1135_s29 = scalar_lea.hbm %s1179_s3, %s673_s23  ;;  %s1130_s22 = int_to_ptr.vmem [resolvable:$true] %s581_s22 }
  0x4b   : > { %268 = vmatpush1.msra.mxu0 %v247_v2  ;;  %v236_v9 = vld [vmem:[#allocation5 + $0x110] sm:$0xff]  ;;  %v235_v10 = vld [vmem:[#allocation5 + $0x108] sm:$0xff]  ;;  %v233_v11 = vld [vmem:[#allocation5 + $0xf8] sm:$0xff]  ;;  %s568_s30 = scalar_lea.sflag [#allocation4], %s1065_s11  ;;  %s861_s4 = scalar_lea.vmem %s1130_s22, 128 }
  0x4c   : > { %269 = vmatprep.subr.mxu0 %v245_v3  ;;  %v232_v12 = vld [vmem:[#allocation5 + $0xf0] sm:$0xff]  ;;  %v230_v13 = vld [vmem:[#allocation5 + $0xe0] sm:$0xff]  ;;  %v229_v14 = vld [vmem:[#allocation5 + $0xd8] sm:$0xff]  ;;  %v258_v36 = vsub.s32 1, %v1092_v35  ;;  %v254_v38 = vsub.s32 0, %v1092_v35  ;;  %p862_p8 = scmp.ne.s32.totalorder %s1130_s22, %s861_s4  ;;  %p1195_p3 = scmp.ne.s32.totalorder %s1189_s6, 0 }
  0x4d   : > { %270 = vmatpush1.msra.mxu0 %v244_v4  ;;  %v227_v15 = vld [vmem:[#allocation5 + $0xc8] sm:$0xff]  ;;  %v226_v16 = vld [vmem:[#allocation5 + $0xc0] sm:$0xff]  ;;  %v224_v17 = vld [vmem:[#allocation5 + $0xb0] sm:$0xff]  ;;  %s937_s16 = smov [#allocation7]  }
  0x4e   : > { %271 = vmatprep.subr.mxu0 %v242_v5  ;;  %v223_v18 = vld [vmem:[#allocation5 + $0xa8] sm:$0xff]  ;;  %v221_v19 = vld [vmem:[#allocation5 + $0x98] sm:$0xff]  ;;  %v220_v20 = vld [vmem:[#allocation5 + $0x90] sm:$0xff]  ;;  %p863_p11 = pnand %p862_p8, %p1195_p3  ;;  %s865_s8 = sshll.u32 %s937_s16, 4  ;;  %s866_s8 = int_to_ptr.vmem [resolvable:$false] %s865_s8 }
  0x4f   : > { %272 = vmatpush1.msra.mxu0 %v241_v6  ;;  %v218_v21 = vld [vmem:[#allocation5 + $0x80] sm:$0xff]  ;;  %v217_v22 = vld [vmem:[#allocation5 + $0x78] sm:$0xff]  ;;  %v215_v23 = vld [vmem:[#allocation5 + $0x68] sm:$0xff]  ;;  %v262_v6 = vsub.s32 2, %v1092_v35  ;;  %s867_s7 = scalar_lea.vmem %s866_s8, 256  ;;  %p868_p10 = scmp.lt.s32.totalorder %s1130_s22, %s866_s8 }
  0x50   : > { %273 = vmatprep.subr.mxu0 %v239_v7  ;;  %v214_v24 = vld [vmem:[#allocation5 + $0x60] sm:$0xff]  ;;  %v212_v25 = vld [vmem:[#allocation5 + $0x50] sm:$0xff]  ;;  %v211_v26 = vld [vmem:[#allocation5 + $0x48] sm:$0xff]  ;;  %p864_p7 = pneg %p863_p11  ;;  %p869_p2 = scmp.lt.s32.totalorder %s867_s7, %s861_s4 }
  0x51   : > { %274 = vmatpush1.msra.mxu0 %v238_v8  ;;  %v209_v27 = vld [vmem:[#allocation5 + $0x38] sm:$0xff]  ;;  %v208_v28 = vld [vmem:[#allocation5 + $0x30] sm:$0xff]  ;;  %v206_v29 = vld [vmem:[#allocation5 + $0x20] sm:$0xff] }
  0x52   : > { %275 = vmatprep.subr.mxu0 %v236_v9  ;;  %v205_v30 = vld [vmem:[#allocation5 + $0x18] sm:$0xff]  ;;  %v203_v31 = vld [vmem:[#allocation5 + $0x8] sm:$0xff]  ;;  %v202_v32 = vld [vmem:[#allocation5] sm:$0xff]  ;;  %p870_p13 = por %p869_p2, %p868_p10 }
  0x53   : > { %276 = vmatpush1.msra.mxu0 %v235_v10  ;;  %v1084_v33 = vld [vmem:[%s1071_s27] sm:$0xff]  ;;  %v246_v46 = vld [vmem:[#allocation5 + $0x160] sm:$0xff]  ;;  %v243_v47 = vld [vmem:[#allocation5 + $0x148] sm:$0xff] }
  0x54   : > { %277 = vmatprep.subr.mxu0 %v233_v11  ;;  %v1098_v37 = vld [vmem:[%s1178_s2] sm:$0x7]  ;;  %v249_v45 = vld [vmem:[#allocation5 + $0x178] sm:$0xff]  ;;  %v234_v50 = vld [vmem:[#allocation5 + $0x100] sm:$0xff]  ;;  %p871_p0 = pnand %p870_p13, %p864_p7 }
  0x55   : > { %278 = vmatpush1.msra.mxu0 %v232_v12  ;;  %v259_v39 = vrot.slane %v1098_v37, %v258_v36  ;;  %v255_v41 = vrot.slane %v1098_v37, %v254_v38  ;;  %698 = vmatpush3.msra.mxu1 %v249_v45  ;;  %v240_v48 = vld [vmem:[#allocation5 + $0x130] sm:$0xff]  ;;  %v237_v49 = vld [vmem:[#allocation5 + $0x118] sm:$0xff]  ;;  %v231_v51 = vld [vmem:[#allocation5 + $0xe8] sm:$0xff] }
  0x56   : > { %279 = vmatprep.subr.mxu0 %v230_v13  ;;  %699 = vmatprep.subr.mxu1 %v935_v0  ;;  %v228_v52 = vld [vmem:[#allocation5 + $0xd0] sm:$0xff]  ;;  %v225_v53 = vld [vmem:[#allocation5 + $0xb8] sm:$0xff]  ;;  %v222_v54 = vld [vmem:[#allocation5 + $0xa0] sm:$0xff] }
  0x57   : > { %280 = vmatpush1.msra.mxu0 %v229_v14  ;;  %700 = vmatpush3.msra.mxu1 %v246_v46  ;;  %v219_v55 = vld [vmem:[#allocation5 + $0x88] sm:$0xff]  ;;  %v216_v56 = vld [vmem:[#allocation5 + $0x70] sm:$0xff]  ;;  %v213_v57 = vld [vmem:[#allocation5 + $0x58] sm:$0xff] }
  0x58   : > { %281 = vmatprep.subr.mxu0 %v227_v15  ;;  %701 = vmatprep.subr.mxu1 %v935_v0  ;;  %v210_v58 = vld [vmem:[#allocation5 + $0x40] sm:$0xff]  ;;  %v207_v59 = vld [vmem:[#allocation5 + $0x28] sm:$0xff]  ;;  %v204_v60 = vld [vmem:[#allocation5 + $0x10] sm:$0xff] }
  0x59   : > { %282 = vmatpush1.msra.mxu0 %v226_v16  ;;  %702 = vmatpush3.msra.mxu1 %v243_v47 }
  0x5a   : > { %283 = vmatprep.subr.mxu0 %v224_v17  ;;  %703 = vmatprep.subr.mxu1 %v935_v0 }
  0x5b   : > { %284 = vmatpush1.msra.mxu0 %v223_v18  ;;  %704 = vmatpush3.msra.mxu1 %v240_v48 }
  0x5c   : > { %285 = vmatprep.subr.mxu0 %v221_v19  ;;  %705 = vmatprep.subr.mxu1 %v935_v0 }
  0x5d   : > { %286 = vmatpush1.msra.mxu0 %v220_v20  ;;  %706 = vmatpush3.msra.mxu1 %v237_v49 }
  0x5e   : > { %287 = vmatprep.subr.mxu0 %v218_v21  ;;  %707 = vmatprep.subr.mxu1 %v935_v0 }
  0x5f   : > { %288 = vmatpush1.msra.mxu0 %v217_v22  ;;  %708 = vmatpush3.msra.mxu1 %v234_v50 }
  0x60   : > { %289 = vmatprep.subr.mxu0 %v215_v23  ;;  %709 = vmatprep.subr.mxu1 %v935_v0 }
  0x61   : > { %290 = vmatpush1.msra.mxu0 %v214_v24  ;;  %710 = vmatpush3.msra.mxu1 %v231_v51 }
  0x62   : > { %291 = vmatprep.subr.mxu0 %v212_v25  ;;  %711 = vmatprep.subr.mxu1 %v935_v0 }
  0x63   : > { %292 = vmatpush1.msra.mxu0 %v211_v26  ;;  %712 = vmatpush3.msra.mxu1 %v228_v52 }
  0x64   : > { %293 = vmatprep.subr.mxu0 %v209_v27  ;;  %713 = vmatprep.subr.mxu1 %v935_v0 }
  0x65   : > { %294 = vmatpush1.msra.mxu0 %v208_v28  ;;  %714 = vmatpush3.msra.mxu1 %v225_v53 }
  0x66   : > { %295 = vmatprep.subr.mxu0 %v206_v29  ;;  %715 = vmatprep.subr.mxu1 %v935_v0 }
  0x67   : > { %296 = vmatpush1.msra.mxu0 %v205_v30  ;;  %716 = vmatpush3.msra.mxu1 %v222_v54 }
  0x68   : > { %297 = vmatprep.subr.mxu0 %v203_v31  ;;  %717 = vmatprep.subr.mxu1 %v935_v0 }
  0x69   : > { %298 = vmatpush1.msra.mxu0 %v202_v32  ;;  %718 = vmatpush3.msra.mxu1 %v219_v55 }
  0x6a   : > { %332 = vmatmul.mubr.f32.vlgmr.msra.gmra.mxu0 %v1084_v33  ;;  %732 = vmatprep.subr.mxu0 %v935_v0 }
  0x6b   : > { %734 = vmatprep.mubr.msk.f32.mxu0 %vm936_vm0, %v935_v0  ;;  %719 = vmatprep.subr.mxu1 %v935_v0 }
  0x6c   : > { %720 = vmatpush3.msra.mxu1 %v216_v56 }
  0x6d   : > { %721 = vmatprep.subr.mxu1 %v935_v0 }
  0x6e   : > { %722 = vmatpush3.msra.mxu1 %v213_v57 }
  0x6f   : > { %723 = vmatprep.subr.mxu1 %v935_v0 }
  0x70   : > { %724 = vmatpush3.msra.mxu1 %v210_v58 }
  0x71   : > { %725 = vmatprep.subr.mxu1 %v935_v0 }
  0x72   : > { %726 = vmatpush3.msra.mxu1 %v207_v59 }
  0x73   : > { %727 = vmatprep.subr.mxu1 %v935_v0 }
  0x74   : > { %728 = vmatpush3.msra.mxu1 %v204_v60 }
  0x75   : > { %730 = vmatmul.mubr.f32.vlgmr.msra.gmra.mxu1 %v1084_v33  ;;  %737 = vmatprep.subr.mxu1 %v935_v0 }
  0x76   : > { %739 = vmatprep.mubr.msk.f32.mxu1 %vm936_vm0, %v935_v0  ;;  %v263_v0 = vrot.slane %v1098_v37, %v262_v6 }
 0x12a   : > { %v333_v40 = vpop.f32.mrf.mxu0 }
 0x12b   : > { %v334_v44 = vadd.f32 %v333_v40, %v255_v41 }
 0x12c   : > { %v335_v42 = vpop.f32.mrf.mxu0 }
 0x12d   : > { %v336_v43 = vadd.f32 %v335_v42, %v259_v39 }
 0x12f   : > { %733 = vmatpush3.xpose.msra.mxu0 %v336_v43 }
 0x132   : > { %735 = vmatmul.mubr.f32.vlgmr.msra.gmra.mxu0 %v334_v44 }
 0x135   : > { %v404_v7 = vpop.f32.mrf.mxu1 }
 0x136   : > { %v405_v9 = vadd.f32 %v404_v7, %v263_v0 }
 0x137   : > { %v731_v8 = vpop.f32.mrf.mxu1 }
 0x138   : > { %738 = vmatpush3.msra.mxu1 %v405_v9 }
 0x1f2   : > { %v474_v61 = vpop.f32.mrf.mxu0 }
 0x1f3   : > { %v479_v62 = vsel %vm478_vm1, %v474_v61, -inf }
 0x1f4   : > { %480 = vmax.xlane.f32.xlu0 %v479_v62  ;;  %v736_v63 = vpop.f32.mrf.mxu0 }
 0x27d   : > { %v481_v1 = vpop.xlane.xlu0 %480 }
 0x27e   : > { %v482_v2 = vsub.f32 %v474_v61, %v481_v1 }
 0x280   : > { %v483_v3 = vmul.f32 1.442695, %v482_v2 }
 0x282   : > { %803 = vpow2.f32 %v483_v3 }
 0x28f   : > { %v804_v4 = vpop.eup %803 }
 0x290   : > { %v485_v5 = vsel %vm478_vm1, %v804_v4, 0.0 }
 0x291   : > { %486 = vadd.xlane.f32.xlu0 %v485_v5 }
 0x31a   : > { %v487_v10 = vpop.xlane.xlu0 %486 }
 0x31b   : > { %805 = vrcp.f32 %v487_v10 }
 0x328   : > { %v806_v11 = vpop.eup %805 }
 0x329   : > { %v489_v12 = vmul.f32 %v806_v11, %v487_v10 }
 0x32b   : > { %v490_v13 = vsub.f32 2.0, %v489_v12 }
 0x32d   : > { %v491_v14 = vmul.f32 %v806_v11, %v490_v13 }
 0x32f   : > { %v492_v15 = vmul.f32 %v804_v4, %v491_v14 }
 0x331   : > { %740 = vmatmul.mubr.msk.f32.vlgmr.msra.gmra.mxu1 %vm478_vm1, %v492_v15 }
 0x3f1   : > { %v562_v16 = vpop.f32.mrf.mxu1 }
 0x3f2   : > { %566 = vst [vmem:[%s200_s17] sm:$0xff] %v562_v16 }
 0x3f3   : > { %v741_v17 = vpop.f32.mrf.mxu1 }
 0x3f4   : > { %874 = shalt.err (!%p871_p0)
}
 0x3f5   : > { %s875_s9 = scalar_lea.hbm %s1135_s29, 128  ;;  %s879_s21 = scalar_lea.hbm %s1179_s3, 256 }
 0x3f6   : > { %p876_p5 = scmp.ne.s32.totalorder %s1135_s29, %s875_s9  ;;  %p880_p1 = scmp.lt.s32.totalorder %s1135_s29, %s1179_s3 }
 0x3f7   : > { %p881_p4 = scmp.lt.s32.totalorder %s879_s21, %s875_s9 }
 0x3f8   : > { %p877_p9 = pnand %p876_p5, %p1195_p3 }
 0x3f9   : > { %p882_p6 = por %p881_p4, %p880_p1 }
 0x3fa   : > { %p878_p12 = pneg %p877_p9 }
 0x3fc   : > { %p883_p8 = pnand %p882_p6, %p878_p12 }
 0x3fe   : > { %886 = shalt.err (!%p883_p8)
}
 0x3ff   : > { %748 = dma.vmem_to_hbm [thread:$0]  (%p1195_p3), %s1130_s22, 128, %s1135_s29, %s568_s30  }
 0x400 PF: > { %s593_s18 = sand.u32 1, %s917_s12   ;;  %p1196_p11 = scmp.ne.s32.totalorder %s1185_s19, 0 }
 0x401   : > { %p1197_p7 = scmp.ge.s32.totalorder %s929_s15, 2  ;;  %s594_s20 = scalar_lea.sflag [#allocation4], %s593_s18 }
 0x403   : > { %p759_p10 = pnand %p1197_p7, %p1196_p11 }
 0x405   : > { %p760_p2 = pneg %p759_p10 }
 0x407   : > { %912 = dma.done.wait (%p760_p2), %s594_s20, 128  }
 0x408   : > { %914 = vsyncadd (%p760_p2), %s594_s20, 4294967168  ;;  %p17_p13 = scmp.ge.s32.totalorder %s1012_s24, 4   ;;  %s1198_s12 = smov %s921_s13 }
 0x409   : > { %s1199_s13 = smov %s925_s14  ;;  %s1200_s14 = smov %s1029_s5 }
 0x40a   : > { %s1201_s15 = smov %s1012_s24  ;;  %19 = sbr.rel (!%p17_p13) target bundleno = 6 (0x6), region = 81 }
 0x40f   :  { %599 = vsyncpa [#allocation3], 1 }
 0x410   :  { %601 = vsyncpa [#allocation3 + $0x1], 1 }
 0x411   :  { %602 = vsyncpa [#allocation6], 1 }
 0x412   :  { %603 = vsyncpa [#allocation4], 1 }
 0x413   :  { %605 = vsyncpa [#allocation4 + $0x1], 1 }

</bundles_post_ra>
